<compile_context>
chip_gen: v6e
topology: v6e:2x2x1
jax: 0.10.0
libtpu: 0.0.40
codegen_flags: <defaults>
</compile_context>

<pallas_src>
import functools

import jax
import jax.numpy as jnp
from jax import lax
from jax.experimental import pallas as pl
from jax.experimental.pallas import tpu as pltpu


def _round_up(a: int, b: int) -> int:
    return -(-a // b) * b


def _gmp_gap_kernel(x_ref, o_ref, sum_ref, max_ref, *, true_l, inv_l, block_l):
    """One (row_block, hw_chunk) grid step.

    x_ref   : (block_r, block_l) input chunk (rows = flattened N*C, lanes = H*W)
    o_ref   : (block_r, 1) output (mean + max), written only at the last chunk
    sum_ref / max_ref : (block_r, 1) f32 running accumulators (VMEM scratch)
    """
    j = pl.program_id(1)

    @pl.when(j == 0)
    def _init():
        sum_ref[...] = jnp.zeros_like(sum_ref)
        max_ref[...] = jnp.full_like(max_ref, -jnp.inf)

    x = x_ref[...]  # native dtype; avoid materializing a full f32 copy

    # Mean: f32 accumulation; zero padding (added in the wrapper) is neutral for sum.
    sum_ref[...] += jnp.sum(x, axis=1, keepdims=True, dtype=jnp.float32)

    # Max: exact in native dtype; mask padded lanes (global col >= true H*W) to -inf.
    col = j * block_l + lax.broadcasted_iota(jnp.int32, x.shape, 1)
    xm = jnp.where(col < true_l, x, -jnp.inf)
    max_ref[...] = jnp.maximum(
        max_ref[...], jnp.max(xm, axis=1, keepdims=True).astype(jnp.float32))

    @pl.when(j == pl.num_programs(1) - 1)
    def _finalize():
        o_ref[...] = (sum_ref[...] * inv_l + max_ref[...]).astype(o_ref.dtype)


def gmp_and_gap(x, *, rows_per_block=256, lanes_per_block=2048):
    """x: (N, C, H, W) -> (N, C, 1, 1); global-average-pool + global-max-pool."""
    N, C, H, W = x.shape
    R, L = N * C, H * W
    x2 = x.reshape(R, L)  # lane-dense: H*W on the 128-wide lane axis

    # --- tile selection -----------------------------------------------------
    # Lane (reduction) axis: use the full L as one block when small (no (.,128)
    # constraint for full-dim blocks), otherwise ~2048-wide chunks (mult of 128).
    if L <= lanes_per_block:
        block_l, Lp = L, L
    else:
        n_chunks = -(-L // lanes_per_block)
        block_l = _round_up(-(-L // n_chunks), 128)
        Lp = n_chunks * block_l
    # Row axis: full R when small, otherwise ~256-row blocks (multiple of 8).
    if R <= rows_per_block:
        block_r, Rp = R, R
    else:
        n_rb = -(-R // rows_per_block)
        block_r = _round_up(-(-R // n_rb), 8)
        Rp = n_rb * block_r

    if (Rp, Lp) != (R, L):
        # Zero padding: neutral for the sum; the max is masked in-kernel.
        x2 = jnp.pad(x2, ((0, Rp - R), (0, Lp - L)))

    grid = (Rp // block_r, Lp // block_l)

    kernel = functools.partial(
        _gmp_gap_kernel, true_l=L, inv_l=1.0 / L, block_l=block_l)

    out2d = pl.pallas_call(
        kernel,
        out_shape=jax.ShapeDtypeStruct((Rp, 1), x.dtype),
        grid_spec=pltpu.PrefetchScalarGridSpec(
            num_scalar_prefetch=0,
            grid=grid,
            in_specs=[pl.BlockSpec((block_r, block_l), lambda i, j: (i, j))],
            out_specs=pl.BlockSpec((block_r, 1), lambda i, j: (i, 0)),
            scratch_shapes=[pltpu.VMEM((block_r, 1), jnp.float32),
                            pltpu.VMEM((block_r, 1), jnp.float32)],
        ),
        compiler_params=pltpu.CompilerParams(
            dimension_semantics=("parallel", "arbitrary"),
            vmem_limit_bytes=32 * 1024 * 1024,
        ),
    )(x2)

    return out2d[:R, 0].reshape(N, C, 1, 1)


def _reference(x):
    gap = jnp.mean(x, axis=(2, 3), keepdims=True)
    gmp = jnp.max(x, axis=(2, 3), keepdims=True)
    return gap + gmp


if __name__ == "__main__":
    key = jax.random.PRNGKey(0)

    # Primary small case consistent with the module.
    N, C, H, W = 2, 4, 16, 16
    x = jax.random.normal(key, (N, C, H, W), dtype=jnp.float32)
    out = gmp_and_gap(x)
    jax.block_until_ready(out)
    ref = _reference(x)
    assert out.shape == (N, C, 1, 1), out.shape
    assert jnp.allclose(out, ref, atol=1e-5, rtol=1e-5), "mismatch vs reference (case 1)"

    # Second case exercising the chunked + padded reduction path (H*W > 2048,
    # not a multiple of 128); all-negative values validate the -inf max masking.
    N2, C2, H2, W2 = 2, 8, 47, 47
    x2 = jax.random.normal(jax.random.PRNGKey(0), (N2, C2, H2, W2), jnp.float32) - 10.0
    out2 = gmp_and_gap(x2)
    jax.block_until_ready(out2)
    ref2 = _reference(x2)
    assert out2.shape == (N2, C2, 1, 1), out2.shape
    assert jnp.allclose(out2, ref2, atol=1e-4, rtol=1e-5), "mismatch vs reference (case 2)"

    print("KERNEL_OK")
</pallas_src>

<mosaic_0001>
module attributes {stable_mosaic.version = 11 : i64} {
  func.func @_gmp_gap_kernel(%arg0: i32, %arg1: i32, %arg2: memref<8x256xf32, #tpu.memory_space<vmem>>, %arg3: memref<8x1xf32, #tpu.memory_space<vmem>>, %arg4: memref<8x1xf32, #tpu.memory_space<vmem>>, %arg5: memref<8x1xf32, #tpu.memory_space<vmem>>) attributes {dimension_semantics = [#tpu.dimension_semantics<parallel>, #tpu.dimension_semantics<arbitrary>], iteration_bounds = array<i64: 1, 1>, scalar_prefetch = 0 : i64, scratch_operands = 2 : i64, tpu.core_type = #tpu.core_type<tc>, window_params = [{transform_indices = @transform_0, window_bounds = array<i64: 8, 256>}, {transform_indices = @transform_1, window_bounds = array<i64: 8, 1>}]} {
    %c0_i32 = arith.constant 0 : i32
    %0 = arith.cmpi eq, %arg1, %c0_i32 : i32
    %1 = arith.extui %0 : i1 to i32
    %c0_i32_0 = arith.constant 0 : i32
    %2 = arith.cmpi ne, %1, %c0_i32_0 : i32
    scf.if %2 {
      %cst_15 = arith.constant 0.000000e+00 : f32
      %25 = vector.broadcast %cst_15 : f32 to vector<8x1xf32>
      %c0_16 = arith.constant 0 : index
      %c0_17 = arith.constant 0 : index
      %26 = vector.load %arg4[%c0_16, %c0_17] : memref<8x1xf32, #tpu.memory_space<vmem>>, vector<8x1xf32>
      tpu.vector_store %arg4[%c0_16, %c0_17], %25 {strides = array<i32>} : memref<8x1xf32, #tpu.memory_space<vmem>>, vector<8x1xf32>,
      %cst_18 = arith.constant 0xFF800000 : f32
      %27 = vector.broadcast %cst_18 : f32 to vector<8x1xf32>
      %c0_19 = arith.constant 0 : index
      %c0_20 = arith.constant 0 : index
      %28 = vector.load %arg5[%c0_19, %c0_20] : memref<8x1xf32, #tpu.memory_space<vmem>>, vector<8x1xf32>
      tpu.vector_store %arg5[%c0_19, %c0_20], %27 {strides = array<i32>} : memref<8x1xf32, #tpu.memory_space<vmem>>, vector<8x1xf32>,
    } else {
    }
    %c0 = arith.constant 0 : index
    %c0_1 = arith.constant 0 : index
    %3 = vector.load %arg2[%c0, %c0_1] : memref<8x256xf32, #tpu.memory_space<vmem>>, vector<8x256xf32>
    %c0_2 = arith.constant 0 : index
    %c0_3 = arith.constant 0 : index
    %4 = vector.load %arg4[%c0_2, %c0_3] : memref<8x1xf32, #tpu.memory_space<vmem>>, vector<8x1xf32>
    %cst = arith.constant dense<0.000000e+00> : vector<8xf32>
    %5 = vector.multi_reduction <add>, %3, %cst [1] : vector<8x256xf32> to vector<8xf32>
    %6 = vector.shape_cast %5 : vector<8xf32> to vector<8x1xf32>
    %7 = arith.addf %4, %6 : vector<8x1xf32>
    %c0_4 = arith.constant 0 : index
    %c0_5 = arith.constant 0 : index
    %8 = vector.load %arg4[%c0_4, %c0_5] : memref<8x1xf32, #tpu.memory_space<vmem>>, vector<8x1xf32>
    tpu.vector_store %arg4[%c0_4, %c0_5], %7 {strides = array<i32>} : memref<8x1xf32, #tpu.memory_space<vmem>>, vector<8x1xf32>,
    %c256_i32 = arith.constant 256 : i32
    %9 = arith.muli %arg1, %c256_i32 : i32
    %10 = tpu.iota {dimensions = array<i32: 1>} : vector<8x256xi32>
    %11 = vector.broadcast %9 : i32 to vector<8x256xi32>
    %12 = arith.addi %11, %10 : vector<8x256xi32>
    %c256_i32_6 = arith.constant 256 : i32
    %13 = vector.broadcast %c256_i32_6 : i32 to vector<8x256xi32>
    %14 = arith.cmpi slt, %12, %13 : vector<8x256xi32>
    %cst_7 = arith.constant 0xFF800000 : f32
    %15 = vector.broadcast %cst_7 : f32 to vector<8x256xf32>
    %16 = arith.select %14, %3, %15 : vector<8x256xi1>, vector<8x256xf32>
    %c0_8 = arith.constant 0 : index
    %c0_9 = arith.constant 0 : index
    %17 = vector.load %arg5[%c0_8, %c0_9] : memref<8x1xf32, #tpu.memory_space<vmem>>, vector<8x1xf32>
    %cst_10 = arith.constant dense<0xFF800000> : vector<8xf32>
    %18 = vector.multi_reduction <maximumf>, %16, %cst_10 [1] : vector<8x256xf32> to vector<8xf32>
    %19 = vector.shape_cast %18 : vector<8xf32> to vector<8x1xf32>
    %20 = arith.maximumf %17, %19 : vector<8x1xf32>
    %c0_11 = arith.constant 0 : index
    %c0_12 = arith.constant 0 : index
    %21 = vector.load %arg5[%c0_11, %c0_12] : memref<8x1xf32, #tpu.memory_space<vmem>>, vector<8x1xf32>
    tpu.vector_store %arg5[%c0_11, %c0_12], %20 {strides = array<i32>} : memref<8x1xf32, #tpu.memory_space<vmem>>, vector<8x1xf32>,
    %c0_i32_13 = arith.constant 0 : i32
    %22 = arith.cmpi eq, %arg1, %c0_i32_13 : i32
    %23 = arith.extui %22 : i1 to i32
    %c0_i32_14 = arith.constant 0 : i32
    %24 = arith.cmpi ne, %23, %c0_i32_14 : i32
    scf.if %24 {
      %c0_15 = arith.constant 0 : index
      %c0_16 = arith.constant 0 : index
      %25 = vector.load %arg4[%c0_15, %c0_16] : memref<8x1xf32, #tpu.memory_space<vmem>>, vector<8x1xf32>
      %cst_17 = arith.constant 3.906250e-03 : f32
      %26 = vector.broadcast %cst_17 : f32 to vector<8x1xf32>
      %27 = arith.mulf %25, %26 : vector<8x1xf32>
      %c0_18 = arith.constant 0 : index
      %c0_19 = arith.constant 0 : index
      %28 = vector.load %arg5[%c0_18, %c0_19] : memref<8x1xf32, #tpu.memory_space<vmem>>, vector<8x1xf32>
      %29 = arith.addf %27, %28 : vector<8x1xf32>
      %c0_20 = arith.constant 0 : index
      %c0_21 = arith.constant 0 : index
      %30 = vector.load %arg3[%c0_20, %c0_21] : memref<8x1xf32, #tpu.memory_space<vmem>>, vector<8x1xf32>
      tpu.vector_store %arg3[%c0_20, %c0_21], %29 {strides = array<i32>} : memref<8x1xf32, #tpu.memory_space<vmem>>, vector<8x1xf32>,
    } else {
    }
    return
  }
  func.func @transform_0(%arg0: i32, %arg1: i32) -> (i32, i32) {
    %c0_i32 = arith.constant 0 : i32
    return %arg0, %arg1 : i32, i32
  }
  func.func @transform_1(%arg0: i32, %arg1: i32) -> (i32, i32) {
    %c0_i32 = arith.constant 0 : i32
    %c0_i32_0 = arith.constant 0 : i32
    return %arg0, %c0_i32 : i32, i32
  }
}

</mosaic_0001>

<bundles_post_ra>
// kernel: tpu_custom_call.1
= control target key start
LH: loop header
LB: loop body
LE: loop exit
PB: predicated region body
PF: predicated region fallthrough
CT: control target
= control target key end

     0   :  { %6 = vsyncpa [#allocation5], 0  ;;  %s91_s6 = smov [#allocation4]   ;;  %s115_s0 = inlined_call_operand.hbm [shape: f32[8,256], index: 0, kind: input, shape index: {}]   ;;  %s116_s1 = inlined_call_operand.vmem [shape: f32[8,1], index: 1, kind: output, shape index: {}]  }
   0x1   :  { %s13_s7 = sshll.u32 %s91_s6, 4  ;;  %s14_s7 = int_to_ptr.vmem [resolvable:$true] %s13_s7 }
   0x2   :  { %s77_s8 = scalar_lea.vmem %s14_s7, 256  ;;  %p82_p1 = scmp.lt.s32.totalorder %s14_s7, %s14_s7 }
   0x3   :  { %p78_p0 = scmp.ne.s32.totalorder %s14_s7, %s77_s8  ;;  %p83_p2 = scmp.lt.s32.totalorder %s77_s8, %s77_s8 }
   0x5   :  { %p84_p3 = por %p83_p2, %p82_p1 }
   0x7   :  { %p85_p4 = pnand %p84_p3, %p78_p0 }
   0x9   :  { %88 = shalt.err (!%p85_p4)
}
   0xa   :  { %16 = dma.hbm_to_vmem [thread:$0]  %s115_s0, 256, %s14_s7, [#allocation5]  }
   0xb   :  { %89 = dma.done.wait [#allocation5], 256  }
   0xc   :  { %90 = vsyncadd [#allocation5], 4294967040  ;;  %vm24_vm0 = vcmask 7168   ;;  %v92_v0 = vmov 0.0   ;;  %v27_v1 = vld [vmem:[#allocation4] sm:$0xff]  ;;  %v28_v2 = vld [vmem:[#allocation4 + $0x8] sm:$0xff] }
   0xd   :  { %25 = vst.msk [vmem:[#allocation2] sm:$0xff] %vm24_vm0, %v92_v0  ;;  %v30_v3 = vadd.f32 %v28_v2, %v27_v1  ;;  %v48_v4 = vmax.f32 %v27_v1, %v28_v2  ;;  %v93_v5 = vmov -inf  }
   0xe   :  { %26 = vst.msk [vmem:[#allocation3] sm:$0xff] %vm24_vm0, %v93_v5 }
   0xf   :  { %31 = vadd.xlane.f32.xlu0 %v30_v3 }
  0x13   :  { %49 = vmax.xlane.f32.xlu0 %v48_v4 }
  0x14   :  { %v29_v6 = vld [vmem:[#allocation2] sm:$0xff] }
  0x15   :  { %v47_v9 = vld [vmem:[#allocation3] sm:$0xff] }
  0x98   :  { %v32_v7 = vpop.xlane.xlu0 %31 }
  0x99   :  { %v33_v8 = vadd.f32 %v32_v7, %v29_v6 }
  0x9b   :  { %35 = vst.msk [vmem:[#allocation2] sm:$0xff] %vm24_vm0, %v33_v8 }
  0x9c   :  { %v50_v10 = vpop.xlane.xlu0 %49 }
  0x9d   :  { %v51_v11 = vmax.f32 %v47_v9, %v50_v10 }
  0x9f   :  { %52 = vst.msk [vmem:[#allocation3] sm:$0xff] %vm24_vm0, %v51_v11 }
  0xa2   :  { %v56_v12 = vld [vmem:[#allocation2] sm:$0xff] }
  0xa3   :  { %v57_v13 = vmul.f32 0.00390625, %v56_v12 }
  0xa6   :  { %v58_v14 = vld [vmem:[#allocation3] sm:$0xff] }
  0xa7   :  { %v59_v15 = vadd.f32 %v58_v14, %v57_v13 }
  0xa9   :  { %60 = vst.msk [vmem:[%s116_s1] sm:$0xff] %vm24_vm0, %v59_v15 }
  0xaa   :  { %65 = vsyncpa [#allocation5], 1 }

</bundles_post_ra>
